<compile_context>
chip_gen: v7x
topology: tpu7x:2x2x1
jax: 0.10.0
libtpu: 0.0.40
codegen_flags: <defaults>
</compile_context>

<pallas_src>
import jax
import jax.numpy as jnp
from jax.experimental import pallas as pl
from jax.experimental.pallas import tpu as pltpu


def _round_up(x, m):
    return ((x + m - 1) // m) * m


def _watermarked_kernel(g_ref, w_ref, beta_ref, out_ref):
    # g_ref:    (tm, L)  lane-packed tile of g-values (caller dtype, f32/bf16)
    # w_ref:    (L, L)   bf16 block-diagonal masked/transposed delta (resident)
    # beta_ref: (1, L)   f32 tiled bias (resident)
    # out_ref:  (tm, L)  f32
    g = g_ref[...]
    # bf16 MXU operands, f32 accumulation; beta added after the f32 dot.
    logits = jnp.dot(g.astype(jnp.bfloat16), w_ref[...],
                     preferred_element_type=jnp.float32) + beta_ref[...]
    p_two = jax.nn.sigmoid(logits)
    # 0.5*((g+0.5)*p + (1-p))  ==  0.5 + p*(0.5*g - 0.25)
    g32 = g.astype(jnp.float32)
    out_ref[...] = (0.5 + p_two * (0.5 * g32 - 0.25)).astype(out_ref.dtype)


def likelihood_watermarked_forward(g_values, beta, delta, *, tm=4096,
                                   lanes_target=128, min_grid_steps=8):
    """g_values: [B, T, D]; beta: [1, 1, D]; delta: [1, 1, D, D] -> [B, T, D] f32.

    g is streamed in its own dtype (no wrapper cast).  `lanes_target=256` can
    be used on v6e/v7x to match the 256x256 MXU; 128 is safe everywhere.
    """
    B, T, D = g_values.shape
    beta_2d = beta.reshape(1, D).astype(jnp.float32)
    delta_2d = delta.reshape(D, D).astype(jnp.float32)

    # --- hoist mask + transpose out of the kernel (constant) ----------------
    # torch.tril(x, diagonal=-1): keep entries with j < i (strictly lower tri).
    tri = jnp.tril(jnp.ones((D, D), dtype=bool), k=-1)
    delta_masked_t = jnp.where(tri, delta_2d, 0.0).T          # (D, D), [j, i]

    # --- lane-dense packing: [N, D] -> [n_rows, L] with L = pack * D --------
    pack = lanes_target // D if (D <= lanes_target and lanes_target % D == 0) else 1
    L = pack * D

    # block-diagonal weight diag(delta_masked_t x pack), bf16 (delta ~ 1e-3,
    # bf16 weight error in the logits is ~1e-6) and f32 tiled beta.
    w_big = jnp.kron(jnp.eye(pack, dtype=jnp.float32),
                     delta_masked_t).astype(jnp.bfloat16)     # (L, L)
    beta_big = jnp.tile(beta_2d, (1, pack))                   # (1, L) f32

    total = B * T * D
    n_rows = max(pl.cdiv(total, L), 8)       # >= one (8, 128) tile
    pad = n_rows * L - total                 # 0 in the common case

    g_flat = g_values.reshape(-1)            # contiguous reshape: free
    if pad:
        g_flat = jnp.pad(g_flat, (0, pad))   # <=127 elems (or tiny-input bump)
    g_pack = g_flat.reshape(n_rows, L)

    # Tile: big enough to amortize per-step overhead, capped so the parallel
    # grid keeps >= min_grid_steps steps (v7x shards this axis over 2 TCs).
    tm_cap = _round_up(pl.cdiv(n_rows, min_grid_steps), 8)
    tm_sel = max(8, min(_round_up(tm, 8), tm_cap))
    grid = (pl.cdiv(n_rows, tm_sel),)        # partial last block is masked

    cost = pl.CostEstimate(
        flops=2 * n_rows * L * L + 4 * n_rows * L,
        transcendentals=n_rows * L,
        bytes_accessed=(g_pack.size * g_pack.dtype.itemsize
                        + n_rows * L * 4                       # f32 output
                        + w_big.size * 2 + beta_big.size * 4),
    )

    out_pack = pl.pallas_call(
        _watermarked_kernel,
        out_shape=jax.ShapeDtypeStruct((n_rows, L), jnp.float32),
        grid_spec=pltpu.PrefetchScalarGridSpec(
            num_scalar_prefetch=0,
            grid=grid,
            in_specs=[
                pl.BlockSpec((tm_sel, L), lambda i: (i, 0)),
                pl.BlockSpec((L, L), lambda i: (0, 0)),   # resident constant
                pl.BlockSpec((1, L), lambda i: (0, 0)),   # resident constant
            ],
            out_specs=pl.BlockSpec((tm_sel, L), lambda i: (i, 0)),
        ),
        compiler_params=pltpu.CompilerParams(
            dimension_semantics=("parallel",),
            vmem_limit_bytes=32 * 1024 * 1024,   # raises v5e's 16MiB default
        ),
        cost_estimate=cost,
    )(g_pack, w_big, beta_big)

    if pad:
        return out_pack.reshape(-1)[:total].reshape(B, T, D)
    return out_pack.reshape(B, T, D)         # contiguous reshape: free


def reference_forward(g_values, beta, delta):
    """Pure-JAX reference matching the PyTorch module exactly."""
    B, T, D = g_values.shape
    x = jnp.broadcast_to(g_values[:, :, None, :], (B, T, D, D))
    mask = jnp.tril(jnp.ones((D, D), dtype=bool), k=-1)
    x = jnp.where(mask, x, 0.0)
    logits = jnp.sum(delta * x, axis=-1) + beta
    p_two = jax.nn.sigmoid(logits)
    p_one = 1.0 - p_two
    return 0.5 * ((g_values + 0.5) * p_two + p_one)


if __name__ == "__main__":
    key = jax.random.PRNGKey(0)
    k_beta, k_delta, k_g, k_g2 = jax.random.split(key, 4)

    B, T, D = 2, 8, 32  # batch, seq, watermarking_depth

    # Deterministic parameter init matching the nn.Module shapes / scales.
    beta = -2.5 + 0.001 * jax.random.normal(k_beta, (1, 1, D), dtype=jnp.float32)
    delta = 0.001 * jax.random.normal(k_delta, (1, 1, D, D), dtype=jnp.float32)

    # g-values are 0/1 indicators in the SynthID detector.
    g_values = jax.random.bernoulli(k_g, p=0.5, shape=(B, T, D)).astype(jnp.float32)

    out = likelihood_watermarked_forward(g_values, beta, delta)
    out = jax.block_until_ready(out)
    ref = reference_forward(g_values, beta, delta)
    assert out.shape == (B, T, D)
    assert jnp.allclose(out, ref, atol=1e-4, rtol=1e-4), "mismatch vs reference"

    # Second check: non-divisible shape -> exercises the small pad, the
    # multi-step grid and the masked partial last block.
    B2, T2 = 3, 41
    g2 = jax.random.bernoulli(k_g2, p=0.5, shape=(B2, T2, D)).astype(jnp.float32)
    out2 = jax.block_until_ready(likelihood_watermarked_forward(g2, beta, delta))
    ref2 = reference_forward(g2, beta, delta)
    assert out2.shape == (B2, T2, D)
    assert jnp.allclose(out2, ref2, atol=1e-4, rtol=1e-4), "mismatch vs reference (ragged)"

    print("KERNEL_OK")
</pallas_src>

<mosaic_0001>
module attributes {stable_mosaic.version = 11 : i64} {
  func.func @_watermarked_kernel(%arg0: i32, %arg1: memref<8x128xf32, #tpu.memory_space<vmem>>, %arg2: memref<128x128xbf16, #tpu.memory_space<vmem>>, %arg3: memref<1x128xf32, #tpu.memory_space<vmem>>, %arg4: memref<8x128xf32, #tpu.memory_space<vmem>>) attributes {dimension_semantics = [#tpu.dimension_semantics<parallel>], iteration_bounds = array<i64: 1>, scalar_prefetch = 0 : i64, scratch_operands = 0 : i64, tpu.core_type = #tpu.core_type<tc>, window_params = [{transform_indices = @transform_0, window_bounds = array<i64: 8, 128>}, {pipeline_mode = #tpu.pipeline_mode<synchronous>, transform_indices = @transform_1, window_bounds = array<i64: 128, 128>}, {pipeline_mode = #tpu.pipeline_mode<synchronous>, transform_indices = @transform_2, window_bounds = array<i64: 1, 128>}, {transform_indices = @transform_3, window_bounds = array<i64: 8, 128>}]} {
    %c0 = arith.constant 0 : index
    %c0_0 = arith.constant 0 : index
    %0 = vector.load %arg1[%c0, %c0_0] : memref<8x128xf32, #tpu.memory_space<vmem>>, vector<8x128xf32>
    %1 = arith.truncf %0 : vector<8x128xf32> to vector<8x128xbf16>
    %c0_1 = arith.constant 0 : index
    %c0_2 = arith.constant 0 : index
    %2 = vector.load %arg2[%c0_1, %c0_2] : memref<128x128xbf16, #tpu.memory_space<vmem>>, vector<128x128xbf16>
    %cst = arith.constant dense<0.000000e+00> : vector<8x128xf32>
    %3 = tpu.matmul %1, %2, %cst {dimension_numbers = #tpu.dot_dimension_numbers<[1], [0], [0], [1], [0, 0, 1, 1], [], []>} : vector<8x128xbf16>, vector<128x128xbf16>, vector<8x128xf32> -> vector<8x128xf32>
    %c0_3 = arith.constant 0 : index
    %c0_4 = arith.constant 0 : index
    %4 = vector.load %arg3[%c0_3, %c0_4] : memref<1x128xf32, #tpu.memory_space<vmem>>, vector<1x128xf32>
    %5 = vector.broadcast %4 : vector<1x128xf32> to vector<8x128xf32>
    %6 = arith.addf %3, %5 : vector<8x128xf32>
    %7 = arith.negf %6 : vector<8x128xf32>
    %8 = math.exp %7 : vector<8x128xf32>
    %cst_5 = arith.constant 1.000000e+00 : f32
    %9 = vector.broadcast %cst_5 : f32 to vector<8x128xf32>
    %10 = arith.addf %9, %8 : vector<8x128xf32>
    %11 = arith.divf %9, %10 : vector<8x128xf32>
    %cst_6 = arith.constant 5.000000e-01 : f32
    %12 = vector.broadcast %cst_6 : f32 to vector<8x128xf32>
    %13 = arith.mulf %12, %0 : vector<8x128xf32>
    %cst_7 = arith.constant 2.500000e-01 : f32
    %14 = vector.broadcast %cst_7 : f32 to vector<8x128xf32>
    %15 = arith.subf %13, %14 : vector<8x128xf32>
    %16 = arith.mulf %11, %15 : vector<8x128xf32>
    %cst_8 = arith.constant 5.000000e-01 : f32
    %17 = vector.broadcast %cst_8 : f32 to vector<8x128xf32>
    %18 = arith.addf %17, %16 : vector<8x128xf32>
    %c0_9 = arith.constant 0 : index
    %c0_10 = arith.constant 0 : index
    %19 = vector.load %arg4[%c0_9, %c0_10] : memref<8x128xf32, #tpu.memory_space<vmem>>, vector<8x128xf32>
    tpu.vector_store %arg4[%c0_9, %c0_10], %18 {strides = array<i32>} : memref<8x128xf32, #tpu.memory_space<vmem>>, vector<8x128xf32>,
    return
  }
  func.func @transform_0(%arg0: i32) -> (i32, i32) {
    %c0_i32 = arith.constant 0 : i32
    %c0_i32_0 = arith.constant 0 : i32
    return %arg0, %c0_i32 : i32, i32
  }
  func.func @transform_1(%arg0: i32) -> (i32, i32) {
    %c0_i32 = arith.constant 0 : i32
    %c0_i32_0 = arith.constant 0 : i32
    %c0_i32_1 = arith.constant 0 : i32
    return %c0_i32, %c0_i32_0 : i32, i32
  }
  func.func @transform_2(%arg0: i32) -> (i32, i32) {
    %c0_i32 = arith.constant 0 : i32
    %c0_i32_0 = arith.constant 0 : i32
    %c0_i32_1 = arith.constant 0 : i32
    return %c0_i32, %c0_i32_0 : i32, i32
  }
  func.func @transform_3(%arg0: i32) -> (i32, i32) {
    %c0_i32 = arith.constant 0 : i32
    %c0_i32_0 = arith.constant 0 : i32
    return %arg0, %c0_i32 : i32, i32
  }
}

</mosaic_0001>

<bundles_post_ra>
// kernel: tpu_custom_call.1
= control target key start
LH: loop header
LB: loop body
LE: loop exit
PB: predicated region body
PF: predicated region fallthrough
CT: control target
= control target key end

     0   :  { %8 = vsyncpa [#allocation3], 0  ;;  %s386_s0 = inlined_call_operand.hbm [shape: f32[8,128], index: 0, kind: input, shape index: {}]   ;;  %s387_s1 = inlined_call_operand.hbm [shape: bf16[128,128], index: 1, kind: input, shape index: {}]   ;;  %s388_s2 = inlined_call_operand.vmem [shape: f32[1,128], index: 2, kind: input, shape index: {}]   ;;  %s389_s3 = inlined_call_operand.hbm [shape: f32[8,128], index: 3, kind: output, shape index: {}]  }
   0x1   :  { %9 = vsyncpa [#allocation6], 0 }
   0x2   :  { %10 = vsyncpa [#allocation4], 0  ;;  %s313_s12 = smov [#allocation2]   ;;  %s314_s14 = smov [#allocation5]  }
   0x3   :  { %s17_s13 = sshll.u32 %s313_s12, 4  ;;  %s26_s15 = sshll.u32 %s314_s14, 4  ;;  %s18_s13 = int_to_ptr.vmem [resolvable:$true] %s17_s13  ;;  %s340_s15 = int_to_ptr.vmem [resolvable:$true] %s26_s15 }
   0x4   :  { %s241_s18 = scalar_lea.hbm %s386_s0, 128 }
   0x5   :  { %p242_p0 = scmp.ne.s32.totalorder %s386_s0, %s241_s18  ;;  %p245_p1 = scmp.lt.u32.totalorder %s241_s18, %s386_s0 }
   0x7   :  { %p247_p2 = pnand %p245_p1, %p242_p0 }
   0x9   :  { %250 = shalt.err (!%p247_p2)
}
   0xa   :  { %s251_s23 = scalar_lea.vmem %s18_s13, 128  ;;  %p256_p4 = scmp.lt.s32.totalorder %s18_s13, %s18_s13 }
   0xb   :  { %p252_p3 = scmp.ne.s32.totalorder %s18_s13, %s251_s23  ;;  %p257_p5 = scmp.lt.s32.totalorder %s251_s23, %s251_s23 }
   0xd   :  { %p258_p6 = por %p257_p5, %p256_p4 }
   0xf   :  { %p259_p7 = pnand %p258_p6, %p252_p3 }
  0x11   :  { %262 = shalt.err (!%p259_p7)
}
  0x12   :  { %20 = dma.hbm_to_vmem [thread:$0]  %s386_s0, 128, %s18_s13, [#allocation3]  }
  0x13   :  { %s263_s28 = scalar_lea.hbm %s387_s1, 1024 }
  0x14   :  { %p264_p8 = scmp.ne.s32.totalorder %s387_s1, %s263_s28  ;;  %p267_p9 = scmp.lt.u32.totalorder %s263_s28, %s387_s1 }
  0x16   :  { %p269_p10 = pnand %p267_p9, %p264_p8 }
  0x18   :  { %272 = shalt.err (!%p269_p10)
}
  0x19   :  { %s273_s6 = scalar_lea.vmem %s340_s15, 1024  ;;  %p278_p12 = scmp.lt.s32.totalorder %s340_s15, %s340_s15 }
  0x1a   :  { %p274_p11 = scmp.ne.s32.totalorder %s340_s15, %s273_s6  ;;  %p279_p13 = scmp.lt.s32.totalorder %s273_s6, %s273_s6 }
  0x1c   :  { %p280_p0 = por %p279_p13, %p278_p12 }
  0x1e   :  { %p281_p1 = pnand %p280_p0, %p274_p11 }
  0x20   :  { %284 = shalt.err (!%p281_p1)
}
  0x21   :  { %s315_s0 = smov 64   ;;  %s316_s7 = smov 4  }
  0x22   :  { %32 = dma.hbm_to_vmem [thread:$0]  %s387_s1, 1024, %s340_s15, [#allocation6], %s315_s0, %s315_s0, %s316_s7  }
  0x23   :  { %307 = dma.done.wait [#allocation3], 128  }
  0x24   :  { %308 = vsyncadd [#allocation3], 4294967168 }
  0x25   :  { %309 = dma.done.wait [#allocation6], 1024  }
  0x26   :  { %310 = vsyncadd [#allocation6], 4294966272  ;;  %v317_v0 = vmov 0.0   ;;  %vm318_vm0 = vmmov 0   ;;  %v229_v1 = vld [vmem:[#allocation5] sm:$0xff]   ;;  %v230_v2 = vld [vmem:[#allocation5 + $0x8] sm:$0xff]  }
  0x27   :  { %202 = vmatprep.subr.bf16.mxu0 %v317_v0  ;;  %218 = vmatprep.mubr.msk.bf16.mxu0 %vm318_vm0, %v317_v0  ;;  %v231_v3 = vld [vmem:[#allocation5 + $0x10] sm:$0xff]   ;;  %v232_v4 = vld [vmem:[#allocation5 + $0x18] sm:$0xff]   ;;  %v233_v5 = vld [vmem:[#allocation5 + $0x20] sm:$0xff]   ;;  %s319_s11 = smov [#allocation7]  }
  0x28   :  { %203 = vmatpush3.bf16.msra.mxu0 %v229_v1  ;;  %v234_v6 = vld [vmem:[#allocation5 + $0x28] sm:$0xff]   ;;  %v235_v7 = vld [vmem:[#allocation5 + $0x30] sm:$0xff]   ;;  %v236_v8 = vld [vmem:[#allocation5 + $0x38] sm:$0xff]   ;;  %s172_s12 = sshll.u32 %s319_s11, 4  ;;  %s173_s12 = int_to_ptr.vmem [resolvable:$true] %s172_s12 }
  0x29   :  { %204 = vmatprep.subr.bf16.mxu0 %v317_v0  ;;  %v42_v9 = vld [vmem:[#allocation2] sm:$0xff]  ;;  %p290_p3 = scmp.lt.s32.totalorder %s173_s12, %s173_s12 }
  0x2a   :  { %v43_v10 = vpack.c.bf16 %v42_v9, %v42_v9  ;;  %v182_v11 = vld [vmem:[%s388_s2] ss:$0 sm:$0xff]  ;;  %v161_v20 = vmul.f32 0.5, %v42_v9  ;;  %s285_s2 = scalar_lea.vmem %s173_s12, 128 }
  0x2b   :  { %p286_p2 = scmp.ne.s32.totalorder %s173_s12, %s285_s2  ;;  %p291_p4 = scmp.lt.s32.totalorder %s285_s2, %s285_s2 }
  0x2c   :  { %205 = vmatpush3.bf16.msra.mxu0 %v230_v2  ;;  %v192_v21 = vadd.f32 -0.25, %v161_v20 }
  0x2d   :  { %206 = vmatprep.subr.bf16.mxu0 %v317_v0  ;;  %p292_p5 = por %p291_p4, %p290_p3 }
  0x2f   :  { %p293_p6 = pnand %p292_p5, %p286_p2 }
  0x30   :  { %207 = vmatpush3.bf16.msra.mxu0 %v231_v3 }
  0x31   :  { %208 = vmatprep.subr.bf16.mxu0 %v317_v0 }
  0x34   :  { %209 = vmatpush3.bf16.msra.mxu0 %v232_v4 }
  0x35   :  { %210 = vmatprep.subr.bf16.mxu0 %v317_v0 }
  0x38   :  { %211 = vmatpush3.bf16.msra.mxu0 %v233_v5 }
  0x39   :  { %212 = vmatprep.subr.bf16.mxu0 %v317_v0 }
  0x3c   :  { %213 = vmatpush3.bf16.msra.mxu0 %v234_v6 }
  0x3d   :  { %214 = vmatprep.subr.bf16.mxu0 %v317_v0 }
  0x40   :  { %215 = vmatpush3.bf16.msra.mxu0 %v235_v7 }
  0x41   :  { %216 = vmatprep.subr.bf16.mxu0 %v317_v0 }
  0x44   :  { %217 = vmatpush3.bf16.msra.mxu0 %v236_v8 }
  0x47   :  { %219 = vmatmul.mubr.bf16.vlgmr.msra.gmra.mrb[0].mxu0 %v43_v10 }
 0x11a   :  { %v149_v12 = vpop.f32.mrb[0].mxu0 }
 0x11b   :  { %v150_v13 = vadd.f32 %v182_v11, %v149_v12  ;;  %v220_v14 = vpop.f32.mrb[1].mxu0 }
 0x11c   :  { %v152_v15 = vpop.f32.mrb[2].mxu0 }
 0x11d   :  { %v191_v16 = vmul.f32 -1.442695, %v150_v13  ;;  %v221_v17 = vpop.f32.mrb[3].mxu0 }
 0x11f   :  { %237 = vpow2.f32 %v191_v16 }
 0x129   :  { %v238_v18 = vpop.eup %237 }
 0x12a   :  { %v158_v19 = vadd.f32 1.0, %v238_v18 }
 0x12c   :  { %239 = vrcp.f32 %v158_v19 }
 0x136   :  { %v240_v22 = vpop.eup %239 }
 0x137   :  { %v163_v23 = vmul.f32 %v240_v22, %v192_v21 }
 0x139   :  { %v164_v24 = vadd.f32 0.5, %v163_v23 }
 0x13b   :  { %165 = vst [vmem:[#allocation7] sm:$0xff] %v164_v24 }
 0x13c   :  { %296 = shalt.err (!%p293_p6)
}
 0x13d   :  { %s297_s15 = scalar_lea.hbm %s389_s3, 128 }
 0x13e   :  { %p298_p7 = scmp.ne.s32.totalorder %s389_s3, %s297_s15  ;;  %p301_p8 = scmp.lt.u32.totalorder %s297_s15, %s389_s3 }
 0x140   :  { %p303_p9 = pnand %p301_p8, %p298_p7 }
 0x142   :  { %306 = shalt.err (!%p303_p9)
}
 0x143   :  { %175 = dma.vmem_to_hbm [thread:$0]  %s173_s12, 128, %s389_s3, [#allocation4]  }
 0x144   :  { %311 = dma.done.wait [#allocation4], 128  }
 0x145   :  { %312 = vsyncadd [#allocation4], 4294967168 }
 0x146   :  { %179 = vsyncpa [#allocation3], 1 }
 0x147   :  { %180 = vsyncpa [#allocation6], 1 }
 0x148   :  { %181 = vsyncpa [#allocation4], 1 }

</bundles_post_ra>
